<compile_context>
chip_gen: v5e
topology: v5e:2x2
jax: 0.10.0
libtpu: 0.0.40
codegen_flags: <defaults>
</compile_context>

<pallas_src>
import functools

import jax
import jax.numpy as jnp
from jax.experimental import pallas as pl
from jax.experimental.pallas import tpu as pltpu


_LANE = 128
_MIN_TILE_N = 512                 # never go below this many lanes per step
_TARGET_STEP_BYTES = 2 << 20      # ~2 MiB of slab bytes per grid step


def _round_up(x, m):
    return ((x + m - 1) // m) * m


def _vmem_capacity_bytes():
    """Physical VMEM of the current chip, with a conservative fallback."""
    try:
        return int(pltpu.get_tpu_info().vmem_capacity_bytes)
    except Exception:
        return 128 << 20  # v5e/v6e physical size; v7x query succeeds anyway


# ----------------------------------------------------------------------------
# Kernel: one column tile of the fused generator GEMV.
#   (1, E_pad) @ (E_pad, TN) + (1, TN) -> (1, TN), f32 accumulation.
# ----------------------------------------------------------------------------
def _hypernet_kernel(emb_ref, w_ref, b_ref, out_ref):
    w = w_ref[...].astype(jnp.float32)       # slab may be bf16 in HBM
    out_ref[...] = (
        jnp.dot(emb_ref[...], w, preferred_element_type=jnp.float32)
        + b_ref[...]
    )


# ----------------------------------------------------------------------------
# One-time parameter preparation (runs eagerly, once per hypernet).
# ----------------------------------------------------------------------------
def prepare_hypernet_params(params, input_dim, output_dim,
                            weight_dtype=jnp.bfloat16,
                            target_step_bytes=_TARGET_STEP_BYTES):
    """Transpose, fuse, pad and cast the generator parameters.

    params (torch nn.Linear convention):
        wg: (in*out, E)   bg: (in*out,)
        wb: (out, E)      bb: (out,)
    Returns a dict of device arrays + Python-int metadata consumed by
    `task_conditional_hypernet` (metadata is kept OUT of the jit trace).
    """
    D = input_dim * output_dim
    wg = jnp.asarray(params["wg"], jnp.float32)          # (D, E)
    wb = jnp.asarray(params["wb"], jnp.float32)          # (out, E)
    bg = jnp.asarray(params["bg"], jnp.float32)          # (D,)
    bb = jnp.asarray(params["bb"], jnp.float32)          # (out,)
    E = wg.shape[1]
    d_tot = D + output_dim

    itemsize = jnp.dtype(weight_dtype).itemsize
    # Sublane packing multiple: 8 rows/vreg for 32-bit, 16 for 16-bit, 32 for
    # 8-bit. Padding E here keeps every (E_pad, tn) slab tile layout-dense.
    sub_mult = 8 * max(1, 4 // itemsize)
    E_pad = _round_up(E, sub_mult)

    # Fused, pre-transposed slab (E_pad, d_pad). Pad columns only to 128.
    d_pad = _round_up(d_tot, _LANE)
    w_cat_t = jnp.concatenate([wg, wb], axis=0).T                 # (E, d_tot)
    w_cat_t = jnp.pad(w_cat_t, ((0, E_pad - E), (0, d_pad - d_tot)))
    w_cat_t = w_cat_t.astype(weight_dtype)
    b_cat = jnp.pad(jnp.concatenate([bg, bb]),
                    (0, d_pad - d_tot)).reshape(1, d_pad)         # f32

    # Adaptive column tile: ~target_step_bytes of slab per grid step so the
    # ~600-cycle per-step pipeline overhead is amortized on all generations.
    tn = _round_up(max(1, target_step_bytes // max(1, E_pad * itemsize)),
                   _LANE)
    tn = max(_MIN_TILE_N, tn)
    tn = min(tn, d_pad)

    # TODO(synk): optional int8 (v5e/v6e) / fp8-e4m3 (v7x) slab with per-tile
    # scales would halve the dominant HBM stream again if precision allows.
    return {
        "w_cat_t": w_cat_t,     # (E_pad, d_pad), weight_dtype
        "b_cat": b_cat,         # (1, d_pad), f32
        "tile_n": int(tn),
        "d_tot": int(d_tot),
        "E": int(E),
        "E_pad": int(E_pad),
    }


# ----------------------------------------------------------------------------
# Jitted forward: only arrays are traced; all metadata is static.
# ----------------------------------------------------------------------------
@functools.partial(
    jax.jit,
    static_argnames=("tile_n", "d_tot", "input_dim", "output_dim"))
def _hypernet_forward(emb2d, w_cat_t, b_cat, *, tile_n, d_tot,
                      input_dim, output_dim):
    E_pad, d_pad = w_cat_t.shape
    tn = tile_n
    n_tiles = pl.cdiv(d_pad, tn)         # last tile may be ragged (padded)

    # Zero-extend the f32 embedding row to the padded contraction dim.
    e_in = emb2d.shape[1]
    if e_in < E_pad:
        emb2d = jnp.pad(emb2d, ((0, 0), (0, E_pad - e_in)))

    w_itemsize = jnp.dtype(w_cat_t.dtype).itemsize
    # Double-buffered per-step working set (+ resident embedding) + slack,
    # capped at 70% of the chip's physical VMEM (64 MiB v7x, 128 MiB v5e/v6e).
    step_bytes = E_pad * tn * w_itemsize + 2 * tn * 4
    need = 2 * step_bytes + E_pad * 4 + (2 << 20)
    vmem_limit = int(min(max(need, 8 << 20),
                         int(_vmem_capacity_bytes() * 0.7)))

    bytes_accessed = (w_cat_t.size * w_itemsize   # stream the slab
                      + b_cat.size * 4            # fused biases
                      + emb2d.size * 4            # embedding row
                      + d_pad * 4)                # output
    cost = pl.CostEstimate(flops=2 * E_pad * d_pad, transcendentals=0,
                           bytes_accessed=bytes_accessed)

    out = pl.pallas_call(
        _hypernet_kernel,
        out_shape=jax.ShapeDtypeStruct((1, d_pad), jnp.float32),
        grid_spec=pltpu.PrefetchScalarGridSpec(
            num_scalar_prefetch=0,
            grid=(n_tiles,),
            in_specs=[
                pl.BlockSpec((1, E_pad), lambda j: (0, 0)),   # emb: resident
                pl.BlockSpec((E_pad, tn), lambda j: (0, j)),  # slab tile
                pl.BlockSpec((1, tn), lambda j: (0, j)),      # bias tile
            ],
            out_specs=pl.BlockSpec((1, tn), lambda j: (0, j)),
        ),
        compiler_params=pltpu.CompilerParams(
            dimension_semantics=("parallel",),   # megacore split on v7x
            vmem_limit_bytes=vmem_limit,
        ),
        cost_estimate=cost,
    )(emb2d, w_cat_t, b_cat)

    D = input_dim * output_dim
    # TODO(synk): emit weight/bias as separate lane-dense kernel outputs to
    # avoid this small padded-slice copy outside the kernel.
    weight = out[0, :D].reshape(output_dim, input_dim)
    bias = out[0, D:d_tot]
    return weight, bias


def task_conditional_hypernet(embeddings, prepared, input_dim, output_dim):
    """Pallas-backed forward of TaskConditionalHyperNet.

    embeddings: (E,) or (1, E) task embedding (kept in f32).
    prepared:   output of `prepare_hypernet_params`.
    Returns (weight (out, in), bias (out,)), both float32.
    """
    emb2d = jnp.asarray(embeddings, jnp.float32).reshape(1, -1)
    return _hypernet_forward(
        emb2d, prepared["w_cat_t"], prepared["b_cat"],
        tile_n=prepared["tile_n"], d_tot=prepared["d_tot"],
        input_dim=input_dim, output_dim=output_dim)
    # TODO(synk): add a batched (B, E) -> (B, out, in) entry point so multiple
    # task embeddings amortize the weight-slab HBM stream in one call.


# ----------------------------------------------------------------------------
# Self-test
# ----------------------------------------------------------------------------
def _init_params(key, task_embedding_size, input_dim, output_dim):
    """Mimics torch.nn.Linear default init U[-1/sqrt(E), +1/sqrt(E)]."""
    D = input_dim * output_dim
    k1, k2, k3, k4 = jax.random.split(key, 4)
    bound = 1.0 / jnp.sqrt(task_embedding_size)
    return {
        "wg": jax.random.uniform(k1, (D, task_embedding_size), jnp.float32,
                                 -bound, bound),
        "bg": jax.random.uniform(k2, (D,), jnp.float32, -bound, bound),
        "wb": jax.random.uniform(k3, (output_dim, task_embedding_size),
                                 jnp.float32, -bound, bound),
        "bb": jax.random.uniform(k4, (output_dim,), jnp.float32, -bound,
                                 bound),
    }


def _check_case(key, task_embedding_size, input_dim, output_dim,
                target_step_bytes=_TARGET_STEP_BYTES):
    k_emb, k_params = jax.random.split(key)
    embeddings = jax.random.normal(k_emb, (task_embedding_size,), jnp.float32)
    params = _init_params(k_params, task_embedding_size, input_dim, output_dim)

    prepared = prepare_hypernet_params(
        params, input_dim, output_dim, target_step_bytes=target_step_bytes)
    weight, bias = task_conditional_hypernet(
        embeddings, prepared, input_dim, output_dim)
    jax.block_until_ready((weight, bias))

    assert weight.shape == (output_dim, input_dim)
    assert bias.shape == (output_dim,)

    # Tight check: reference built with identically bf16-rounded weights,
    # f32 embedding/bias, f32 accumulation.
    wg_c = params["wg"].astype(jnp.bfloat16).astype(jnp.float32)
    wb_c = params["wb"].astype(jnp.bfloat16).astype(jnp.float32)
    ref_w = (embeddings @ wg_c.T + params["bg"]).reshape(output_dim, input_dim)
    ref_b = embeddings @ wb_c.T + params["bb"]
    assert jnp.allclose(weight, ref_w, atol=2e-3, rtol=2e-3)
    assert jnp.allclose(bias, ref_b, atol=2e-3, rtol=2e-3)

    # Loose check against the full-precision (torch f32) reference; the only
    # error source is the one-time bf16 rounding of the weight slab.
    ref_w32 = (embeddings @ params["wg"].T + params["bg"]).reshape(
        output_dim, input_dim)
    ref_b32 = embeddings @ params["wb"].T + params["bb"]
    assert jnp.allclose(weight, ref_w32, atol=5e-2, rtol=5e-2)
    assert jnp.allclose(bias, ref_b32, atol=5e-2, rtol=5e-2)


if __name__ == "__main__":
    key = jax.random.PRNGKey(0)
    k1, k2, k3 = jax.random.split(key, 3)

    # Small case (single-tile grid, d_tot < 512).
    _check_case(k1, task_embedding_size=32, input_dim=16, output_dim=8)
    # Larger case (wide slab, still single adaptive tile).
    _check_case(k2, task_embedding_size=32, input_dim=64, output_dim=32)
    # Multi-step pipeline with a ragged last tile (small target bytes forces
    # tn=1024 while d_pad=1664 -> grid of 2, last block partial).
    _check_case(k3, task_embedding_size=32, input_dim=96, output_dim=16,
                target_step_bytes=64 * 1024)

    print("KERNEL_OK")
</pallas_src>

<mosaic_0001>
module attributes {stable_mosaic.version = 11 : i64} {
  func.func @_hypernet_kernel(%arg0: i32, %arg1: memref<1x32xf32, #tpu.memory_space<vmem>>, %arg2: memref<32x256xbf16, #tpu.memory_space<vmem>>, %arg3: memref<1x256xf32, #tpu.memory_space<vmem>>, %arg4: memref<1x256xf32, #tpu.memory_space<vmem>>) attributes {dimension_semantics = [#tpu.dimension_semantics<parallel>], iteration_bounds = array<i64: 1>, scalar_prefetch = 0 : i64, scratch_operands = 0 : i64, tpu.core_type = #tpu.core_type<tc>, window_params = [{pipeline_mode = #tpu.pipeline_mode<synchronous>, transform_indices = @transform_0, window_bounds = array<i64: 1, 32>}, {transform_indices = @transform_1, window_bounds = array<i64: 32, 256>}, {transform_indices = @transform_2, window_bounds = array<i64: 1, 256>}, {transform_indices = @transform_3, window_bounds = array<i64: 1, 256>}]} {
    %c0 = arith.constant 0 : index
    %c0_0 = arith.constant 0 : index
    %0 = vector.load %arg2[%c0, %c0_0] : memref<32x256xbf16, #tpu.memory_space<vmem>>, vector<32x256xbf16>
    %1 = arith.extf %0 : vector<32x256xbf16> to vector<32x256xf32>
    %c0_1 = arith.constant 0 : index
    %c0_2 = arith.constant 0 : index
    %2 = vector.load %arg1[%c0_1, %c0_2] : memref<1x32xf32, #tpu.memory_space<vmem>>, vector<1x32xf32>
    %cst = arith.constant dense<0.000000e+00> : vector<1x256xf32>
    %3 = tpu.matmul %2, %1, %cst {dimension_numbers = #tpu.dot_dimension_numbers<[1], [0], [0], [1], [0, 0, 1, 1], [], []>} : vector<1x32xf32>, vector<32x256xf32>, vector<1x256xf32> -> vector<1x256xf32>
    %c0_3 = arith.constant 0 : index
    %c0_4 = arith.constant 0 : index
    %4 = vector.load %arg3[%c0_3, %c0_4] : memref<1x256xf32, #tpu.memory_space<vmem>>, vector<1x256xf32>
    %5 = arith.addf %3, %4 : vector<1x256xf32>
    %c0_5 = arith.constant 0 : index
    %c0_6 = arith.constant 0 : index
    %6 = vector.load %arg4[%c0_5, %c0_6] : memref<1x256xf32, #tpu.memory_space<vmem>>, vector<1x256xf32>
    tpu.vector_store %arg4[%c0_5, %c0_6], %5 {strides = array<i32>} : memref<1x256xf32, #tpu.memory_space<vmem>>, vector<1x256xf32>,
    return
  }
  func.func @transform_0(%arg0: i32) -> (i32, i32) {
    %c0_i32 = arith.constant 0 : i32
    %c0_i32_0 = arith.constant 0 : i32
    %c0_i32_1 = arith.constant 0 : i32
    return %c0_i32, %c0_i32_0 : i32, i32
  }
  func.func @transform_1(%arg0: i32) -> (i32, i32) {
    %c0_i32 = arith.constant 0 : i32
    %c0_i32_0 = arith.constant 0 : i32
    return %c0_i32, %arg0 : i32, i32
  }
  func.func @transform_2(%arg0: i32) -> (i32, i32) {
    %c0_i32 = arith.constant 0 : i32
    %c0_i32_0 = arith.constant 0 : i32
    return %c0_i32, %arg0 : i32, i32
  }
  func.func @transform_3(%arg0: i32) -> (i32, i32) {
    %c0_i32 = arith.constant 0 : i32
    %c0_i32_0 = arith.constant 0 : i32
    return %c0_i32, %arg0 : i32, i32
  }
}

</mosaic_0001>

<bundles_post_ra>
// kernel: squeeze.2
= control target key start
LH: loop header
LB: loop body
LE: loop exit
PB: predicated region body
PF: predicated region fallthrough
CT: control target
= control target key end

     0   :  { %s130_s0 = inlined_call_operand.vmem [shape: f32[128], index: 0, kind: input, shape index: {}]   ;;  %s131_s1 = inlined_call_operand.hbm [shape: f32[8,16], index: 1, kind: output, shape index: {}]  }
   0x1   :  { %v5_v0 = vld [vmem:[%s130_s0] sm:$0x1] }
   0x2   :  { %6 = vst [vmem:[#allocation2] sm:$0x1] %v5_v0 }
   0x3   :  { %2 = vsyncpa [#allocation1], 0  ;;  %s98_s0 = smov 112   ;;  %s99_s8 = smov 80   ;;  %vm8_vm0 = vcmask 130048  }
   0x4   :  { %s100_s9 = smov 48   ;;  %s101_s10 = smov 96  }
   0x5   :  { %s102_s11 = smov 64   ;;  %s103_s12 = smov 32  }
   0x6   :  { %s104_s13 = smov 16   ;;  %s105_s14 = smov [#allocation0]  }
   0x7   :  { %s55_s15 = sshll.u32 %s105_s14, 4  ;;  %s57_s1 = sshll.u32 %s131_s1, 4  ;;  %s56_s15 = int_to_ptr.vmem [resolvable:$true] %s55_s15  ;;  %s58_s1 = int_to_ptr.hbm [resolvable:$true] %s57_s1 }
   0x9   :  { %v10_v1 = vld [vmem:[#allocation2] sm:$0x1]  }
   0xa   :  { %v22_v2 = vld [vmem:[#allocation2] sm:$0x1]   ;;  %11 = vrot.lane.b32.xlu0 %v10_v1, %s98_s0 }
   0xb   :  { %23 = vrot.lane.b32.xlu1 %v22_v2, %s99_s8  ;;  %v34_v3 = vld [vmem:[#allocation2] sm:$0x1]  }
   0xc   :  { %35 = vrot.lane.b32.xlu2 %v34_v3, %s100_s9  ;;  %v16_v4 = vld [vmem:[#allocation2] sm:$0x1]  }
   0xd   :  { %v28_v5 = vld [vmem:[#allocation2] sm:$0x1]  }
   0xe   :  { %v40_v6 = vld [vmem:[#allocation2] sm:$0x1]  }
   0xf   :  { %v46_v7 = vld [vmem:[#allocation2] sm:$0x1]  }
  0x10   :  { %v7_v9 = vld [vmem:[#allocation2] sm:$0x1]  }
  0x11   :  { %9 = vst.msk [vmem:[#allocation0] sm:$0x1] %vm8_vm0, %v7_v9  }
  0x12   :  { %17 = vrot.lane.b32.xlu0 %v16_v4, %s101_s10 }
  0x13   :  { %29 = vrot.lane.b32.xlu1 %v28_v5, %s102_s11 }
  0x14   :  { %41 = vrot.lane.b32.xlu2 %v40_v6, %s103_s12 }
  0x1a   :  { %47 = vrot.lane.b32.xlu0 %v46_v7, %s104_s13 }
  0x66   :  { %v36_v8 = vpop.permute.xlu2 %35  }
  0x67   :  { %39 = vst.msk [vmem:[#allocation0 + $0x5] sm:$0x1] %vm8_vm0, %v36_v8  }
  0x6e   :  { %v42_v10 = vpop.permute.xlu2 %41  }
  0x6f   :  { %45 = vst.msk [vmem:[#allocation0 + $0x6] sm:$0x1] %vm8_vm0, %v42_v10  }
  0x7c   :  { %v12_v11 = vpop.permute.xlu0 %11  }
  0x7d   :  { %v24_v12 = vpop.permute.xlu1 %23   ;;  %15 = vst.msk [vmem:[#allocation0 + $0x1] sm:$0x1] %vm8_vm0, %v12_v11  }
  0x7e   :  { %27 = vst.msk [vmem:[#allocation0 + $0x3] sm:$0x1] %vm8_vm0, %v24_v12  }
  0x84   :  { %v18_v13 = vpop.permute.xlu0 %17  }
  0x85   :  { %v30_v14 = vpop.permute.xlu1 %29   ;;  %21 = vst.msk [vmem:[#allocation0 + $0x2] sm:$0x1] %vm8_vm0, %v18_v13  }
  0x86   :  { %33 = vst.msk [vmem:[#allocation0 + $0x4] sm:$0x1] %vm8_vm0, %v30_v14  }
  0x8c   :  { %v48_v15 = vpop.permute.xlu0 %47  }
  0x8d   :  { %51 = vst.msk [vmem:[#allocation0 + $0x7] sm:$0x1] %vm8_vm0, %v48_v15  }
  0x8e   :  { %60 = dma.vmem_to_hbm [thread:$0]  %s56_s15, 128, %s58_s1, [#allocation1]  }
  0x8f   :  { %96 = dma.done.wait [#allocation1], 128  }
  0x90   :  { %97 = vsyncadd [#allocation1], 4294967168 }
  0x91   :  { %63 = vsyncpa [#allocation1], 1 }

// kernel: _hypernet_forward.1
= control target key start
LH: loop header
LB: loop body
LE: loop exit
PB: predicated region body
PF: predicated region fallthrough
CT: control target
= control target key end

     0   :  { %8 = vsyncpa [#allocation3], 0  ;;  %s257_s0 = inlined_call_operand.hbm [shape: f32[1,32], index: 0, kind: input, shape index: {}]   ;;  %s258_s1 = inlined_call_operand.hbm [shape: bf16[32,256], index: 1, kind: input, shape index: {}]   ;;  %s259_s2 = inlined_call_operand.hbm [shape: f32[1,256], index: 2, kind: input, shape index: {}]   ;;  %s260_s3 = inlined_call_operand.vmem [shape: f32[1,256], index: 3, kind: output, shape index: {}]  }
   0x1   :  { %9 = vsyncpa [#allocation5], 0  ;;  %s25_s14 = sshll.u32 %s258_s1, 4  ;;  %s220_s15 = smov [#allocation4]   ;;  %s26_s14 = int_to_ptr.hbm [resolvable:$true] %s25_s14 }
   0x2   :  { %s27_s16 = sshll.u32 %s220_s15, 4  ;;  %s15_s19 = sshll.u32 %s257_s0, 4  ;;  %s28_s16 = int_to_ptr.vmem [resolvable:$true] %s27_s16  ;;  %s16_s19 = int_to_ptr.hbm [resolvable:$true] %s15_s19 }
   0x3   :  { %s221_s20 = smov 128   ;;  %s222_s21 = smov 8  }
   0x4   :  { %33 = dma.hbm_to_vmem [thread:$0]  %s26_s14, 512, %s28_s16, [#allocation5], %s221_s20, %s221_s20, %s222_s21  }
   0x5   :  { %s223_s22 = smov [#allocation2]   ;;  %s39_s26 = sshll.u32 %s259_s2, 4  ;;  %s40_s26 = int_to_ptr.hbm [resolvable:$true] %s39_s26 }
   0x6   :  { %s17_s23 = sshll.u32 %s223_s22, 4  ;;  %s224_s1 = smov [#allocation6]   ;;  %s18_s23 = int_to_ptr.vmem [resolvable:$true] %s17_s23 }
   0x7   :  { %20 = dma.hbm_to_vmem [thread:$0]  %s16_s19, 16, %s18_s23, [#allocation3]  }
   0x8   :  { %s41_s27 = sshll.u32 %s224_s1, 4  ;;  %s42_s27 = int_to_ptr.vmem [resolvable:$true] %s41_s27 }
   0x9   :  { %44 = dma.hbm_to_vmem [thread:$0]  %s40_s26, 32, %s42_s27, [#allocation5]  }
   0xa   :  { %216 = dma.done.wait [#allocation3], 16  }
   0xb   :  { %217 = vsyncadd [#allocation3], 4294967280 }
   0xc   :  { %218 = dma.done.wait [#allocation5], 544  }
   0xd   :  { %219 = vsyncadd [#allocation5], 4294966752  ;;  %v60_v0 = vld [vmem:[#allocation4 + $0x18] sm:$0xff]  ;;  %v59_v1 = vld [vmem:[#allocation4 + $0x10] sm:$0xff]  ;;  %vm76_vm0 = vcmask 261120   ;;  %v126_v16 = vlaneseq  ;;  %vm123_vm1 = vcmask 1040384  }
   0xe   :  { %v58_v2 = vld [vmem:[#allocation4 + $0x8] sm:$0xff]  ;;  %v68_v3 = vunpack.c.h.bf16 %v60_v0  ;;  %v67_v4 = vunpack.c.l.bf16 %v60_v0  ;;  %v66_v5 = vunpack.c.h.bf16 %v59_v1  ;;  %v65_v6 = vunpack.c.l.bf16 %v59_v1  ;;  %v57_v7 = vld [vmem:[#allocation4] sm:$0xff]  ;;  %v69_v12 = vld [vmem:[#allocation2] sm:$0x1] }
   0xf   :  { %v64_v8 = vunpack.c.h.bf16 %v58_v2  ;;  %v63_v9 = vunpack.c.l.bf16 %v58_v2  ;;  %v62_v10 = vunpack.c.h.bf16 %v57_v7  ;;  %v61_v11 = vunpack.c.l.bf16 %v57_v7  ;;  %v70_v13 = vld [vmem:[#allocation6] sm:$0x3] }
  0x10   :  { %112 = vmatpush.msra.mxu1 %v68_v3  ;;  %92 = vmatpush.msra.mxu0 %v67_v4  ;;  %v73_v14 = vperm.slane %v70_v13, 1  ;;  %v72_v15 = vperm.slane %v70_v13, 0  ;;  %vm128_vm2 = vcmp.lt.s32.totalorder %v126_v16, 256 }
  0x12   :  { %113 = vmatpush.msra.mxu1 %v66_v5  ;;  %93 = vmatpush.msra.mxu0 %v65_v6 }
  0x14   :  { %114 = vmatpush.msra.mxu1 %v64_v8  ;;  %94 = vmatpush.msra.mxu0 %v63_v9 }
  0x16   :  { %115 = vmatpush.msra.mxu1 %v62_v10  ;;  %95 = vmatpush.msra.mxu0 %v61_v11 }
  0x17   :  { %138 = vmatmul.msk.f32.vlgmr.msra.gmra.mxu1 %vm76_vm0, %v69_v12  ;;  %137 = vmatmul.msk.f32.vlgmr.msra.gmra.mxu0 %vm76_vm0, %v69_v12 }
  0x94   :  { %v117_v17 = vpop.f32.mrf.mxu1  ;;  %v97_v18 = vpop.f32.mrf.mxu0 }
  0x95   :  { %v118_v19 = vadd.f32 %v117_v17, %v73_v14  ;;  %v98_v20 = vadd.f32 %v97_v18, %v72_v15 }
  0x97   :  { %v122_v21 = vrot.slane %v118_v19, 7 }
  0x99   :  { %v124_v22 = vsel %vm123_vm1, %v98_v20, %v122_v21 }
  0x9a   :  { %130 = vst.msk [vmem:[%s260_s3] sm:$0x3] %vm128_vm2, %v124_v22 }
  0x9b   :  { %135 = vsyncpa [#allocation3], 1 }
  0x9c   :  { %136 = vsyncpa [#allocation5], 1 }

</bundles_post_ra>
